<compile_context>
chip_gen: v7x
topology: tpu7x:2x2x1
jax: 0.10.0
libtpu: 0.0.40
codegen_flags: <defaults>
</compile_context>

<pallas_src>
import functools

import jax
import jax.numpy as jnp
from jax.experimental import pallas as pl
from jax.experimental.pallas import tpu as pltpu

HIDDEN = 600
HIDDEN_PAD = 640          # 5 * 128 lanes
NEG_SLOPE = 0.01          # F.leaky_relu default


def _round_up(x, m):
    return ((x + m - 1) // m) * m


def _cdiv(a, b):
    return -(-a // b)


def _leaky_relu(x):
    # slope in (0, 1)  =>  leaky_relu(x) == max(x, slope * x): 2 VPU ops, not 3.
    return jnp.maximum(x, NEG_SLOPE * x)


def disnet_kernel(x_ref, w1_ref, b1_ref, w2_ref, b2_ref, w3r_ref, b3_ref, o_ref):
    """Whole DisNet forward for one batch tile, fused in VMEM."""
    b1 = b1_ref[...]
    b2 = b2_ref[...]
    ep_dtype = b1.dtype                            # bf16 on v6e/v7x, f32 on v5e

    x = x_ref[...].astype(jnp.bfloat16)            # bf16 MXU operand

    # fc1: MXU (bf16 in / f32 acc); bias + LeakyReLU in the epilogue dtype.
    h1 = jnp.dot(x, w1_ref[...], preferred_element_type=jnp.float32)
    h1 = _leaky_relu(h1.astype(ep_dtype) + b1)

    # fc2: MXU; when ep_dtype is bf16 the cast below is a no-op.
    h2 = jnp.dot(h1.astype(jnp.bfloat16), w2_ref[...],
                 preferred_element_type=jnp.float32)
    h2 = _leaky_relu(h2.astype(ep_dtype) + b2)

    # fc3: an N=1 matmul would waste an MXU pass; VPU multiply + XLU lane
    # reduce.  w3 row is f32 so the product/sum stay f32 for accuracy.
    out = jnp.sum(h2 * w3r_ref[...], axis=-1, keepdims=True) + b3_ref[...]
    o_ref[...] = out.astype(o_ref.dtype)


def prepare_params(w1, b1, w2, b2, w3, b3, *, epilogue_dtype=jnp.bfloat16):
    """One-time parameter prep (hoisted out of the per-forward path).

    Zero-pads hidden 600 -> 640, casts MXU weights to bf16, casts biases to the
    epilogue dtype, and lays w3 out as a [1, 640] row.  Padding is exact: padded
    h1/h2 lanes stay 0 through LeakyReLU and the padded w2 rows / w3 entries
    are 0, so they never contribute.
    """
    ph = HIDDEN_PAD - HIDDEN
    w1p = jnp.pad(w1, ((0, 0), (0, ph))).astype(jnp.bfloat16)        # [in, 640]
    b1p = jnp.pad(b1, ((0, 0), (0, ph))).astype(epilogue_dtype)      # [1, 640]
    w2p = jnp.pad(w2, ((0, ph), (0, ph))).astype(jnp.bfloat16)       # [640, 640]
    b2p = jnp.pad(b2, ((0, 0), (0, ph))).astype(epilogue_dtype)      # [1, 640]
    w3r = jnp.pad(w3.T, ((0, 0), (0, ph))).astype(jnp.float32)       # [1, 640]
    b3p = b3.astype(jnp.float32)                                     # [1, 1]
    return w1p, b1p, w2p, b2p, w3r, b3p


def _choose_batch_tile(batch, block_b):
    """Batch tile: multiple of 8, ~block_b, and an even number of roughly equal
    grid steps whenever the grid has more than one step (balances v7x's two
    TensorCores under dimension_semantics=("parallel",))."""
    n = max(1, _cdiv(batch, max(block_b, 8)))
    if n > 1 and n % 2 == 1:
        n += 1
    bb = _round_up(_cdiv(batch, n), 8)
    return bb, _cdiv(batch, bb)


@functools.partial(jax.jit, static_argnames=("block_b",))
def disnet_forward(x, w1p, b1p, w2p, b2p, w3r, b3p, *, block_b=1024):
    """Fused DisNet forward.  Expects parameters from prepare_params()."""
    B, dim_in = x.shape
    bb, steps = _choose_batch_tile(B, block_b)

    # VMEM footprint (double-buffered tiles + intermediates headroom), clamped
    # under v7x's 64 MiB physical VMEM (v5e/v6e have 128 MiB and could go higher).
    vmem_est = (
        2 * bb * dim_in * 4                # x tile (f32), double-buffered
        + 2 * dim_in * HIDDEN_PAD * 2      # w1 (bf16), double-buffered
        + 2 * HIDDEN_PAD * HIDDEN_PAD * 2  # w2 (bf16), double-buffered
        + 2 * 4 * HIDDEN_PAD * 4           # b1/b2/w3row/b3, double-buffered
        + 2 * bb * 4                       # output tile, double-buffered
        + 6 * bb * HIDDEN_PAD * 4          # h1/h2/f32 dot accumulators headroom
    )
    vmem_limit = int(min(max(vmem_est, 32 << 20), 56 << 20))

    # Weights/biases are small; constant index maps keep them VMEM-resident.
    full = lambda shape: pl.BlockSpec(shape, lambda i: (0, 0))

    return pl.pallas_call(
        disnet_kernel,
        out_shape=jax.ShapeDtypeStruct((B, 1), x.dtype),
        grid_spec=pltpu.PrefetchScalarGridSpec(
            num_scalar_prefetch=0,
            grid=(steps,),
            in_specs=[
                pl.BlockSpec((bb, dim_in), lambda i: (i, 0)),   # x tile
                full((dim_in, HIDDEN_PAD)),                     # w1 (bf16)
                full((1, HIDDEN_PAD)),                          # b1
                full((HIDDEN_PAD, HIDDEN_PAD)),                 # w2 (bf16)
                full((1, HIDDEN_PAD)),                          # b2
                full((1, HIDDEN_PAD)),                          # w3 row (f32)
                full((1, 1)),                                   # b3
            ],
            out_specs=pl.BlockSpec((bb, 1), lambda i: (i, 0)),
        ),
        compiler_params=pltpu.CompilerParams(
            dimension_semantics=("parallel",),
            vmem_limit_bytes=vmem_limit,
        ),
    )(x, w1p, b1p, w2p, b2p, w3r, b3p)


def init_params(key, dim_in):
    """nn.Linear-style init: uniform(-1/sqrt(fan_in), +1/sqrt(fan_in)).

    Weights stored pre-transposed as [in, out]; biases as [1, out].
    """
    ks = jax.random.split(key, 6)

    def linear(kw, kb, fan_in, fan_out):
        bound = 1.0 / jnp.sqrt(jnp.float32(fan_in))
        w = jax.random.uniform(kw, (fan_in, fan_out), jnp.float32, -bound, bound)
        b = jax.random.uniform(kb, (1, fan_out), jnp.float32, -bound, bound)
        return w, b

    w1, b1 = linear(ks[0], ks[1], dim_in, HIDDEN)
    w2, b2 = linear(ks[2], ks[3], HIDDEN, HIDDEN)
    w3, b3 = linear(ks[4], ks[5], HIDDEN, 1)
    return w1, b1, w2, b2, w3, b3


def disnet_reference(x, w1, b1, w2, b2, w3, b3):
    h = jax.nn.leaky_relu(x @ w1 + b1, NEG_SLOPE)
    h = jax.nn.leaky_relu(h @ w2 + b2, NEG_SLOPE)
    return h @ w3 + b3


if __name__ == "__main__":
    key = jax.random.PRNGKey(0)

    # (batch, dim_in, block_b): a small single-tile case and a multi-tile case
    # with an even grid and a ragged last tile.
    configs = [(16, 32, 1024), (520, 48, 256)]

    for batch, dim_in, block_b in configs:
        k_x, k_p = jax.random.split(jax.random.fold_in(key, batch))
        x = jax.random.normal(k_x, (batch, dim_in), jnp.float32)
        raw = init_params(k_p, dim_in)
        params = prepare_params(*raw)          # one-time prep, hoisted

        out = jax.block_until_ready(disnet_forward(x, *params, block_b=block_b))
        ref = disnet_reference(x, *raw)

        assert out.shape == (batch, 1), out.shape
        max_err = float(jnp.max(jnp.abs(out - ref)))
        # bf16 MXU operands + bf16 epilogue with f32 accumulation.
        assert jnp.allclose(out, ref, atol=3e-2, rtol=3e-2), max_err

    print("KERNEL_OK")
</pallas_src>

<mosaic_0001>
module attributes {stable_mosaic.version = 11 : i64} {
  func.func @disnet_kernel(%arg0: i32, %arg1: memref<16x32xf32, #tpu.memory_space<vmem>>, %arg2: memref<32x640xbf16, #tpu.memory_space<vmem>>, %arg3: memref<1x640xbf16, #tpu.memory_space<vmem>>, %arg4: memref<640x640xbf16, #tpu.memory_space<vmem>>, %arg5: memref<1x640xbf16, #tpu.memory_space<vmem>>, %arg6: memref<1x640xf32, #tpu.memory_space<vmem>>, %arg7: memref<1x1xf32, #tpu.memory_space<vmem>>, %arg8: memref<16x1xf32, #tpu.memory_space<vmem>>) attributes {dimension_semantics = [#tpu.dimension_semantics<parallel>], iteration_bounds = array<i64: 1>, scalar_prefetch = 0 : i64, scratch_operands = 0 : i64, tpu.core_type = #tpu.core_type<tc>, window_params = [{transform_indices = @transform_0, window_bounds = array<i64: 16, 32>}, {pipeline_mode = #tpu.pipeline_mode<synchronous>, transform_indices = @transform_1, window_bounds = array<i64: 32, 640>}, {pipeline_mode = #tpu.pipeline_mode<synchronous>, transform_indices = @transform_2, window_bounds = array<i64: 1, 640>}, {pipeline_mode = #tpu.pipeline_mode<synchronous>, transform_indices = @transform_3, window_bounds = array<i64: 640, 640>}, {pipeline_mode = #tpu.pipeline_mode<synchronous>, transform_indices = @transform_4, window_bounds = array<i64: 1, 640>}, {pipeline_mode = #tpu.pipeline_mode<synchronous>, transform_indices = @transform_5, window_bounds = array<i64: 1, 640>}, {pipeline_mode = #tpu.pipeline_mode<synchronous>, transform_indices = @transform_6, window_bounds = array<i64: 1, 1>}, {transform_indices = @transform_7, window_bounds = array<i64: 16, 1>}]} {
    %c0 = arith.constant 0 : index
    %c0_0 = arith.constant 0 : index
    %0 = vector.load %arg3[%c0, %c0_0] : memref<1x640xbf16, #tpu.memory_space<vmem>>, vector<1x640xbf16>
    %c0_1 = arith.constant 0 : index
    %c0_2 = arith.constant 0 : index
    %1 = vector.load %arg5[%c0_1, %c0_2] : memref<1x640xbf16, #tpu.memory_space<vmem>>, vector<1x640xbf16>
    %c0_3 = arith.constant 0 : index
    %c0_4 = arith.constant 0 : index
    %2 = vector.load %arg1[%c0_3, %c0_4] : memref<16x32xf32, #tpu.memory_space<vmem>>, vector<16x32xf32>
    %3 = arith.truncf %2 : vector<16x32xf32> to vector<16x32xbf16>
    %c0_5 = arith.constant 0 : index
    %c0_6 = arith.constant 0 : index
    %4 = vector.load %arg2[%c0_5, %c0_6] : memref<32x640xbf16, #tpu.memory_space<vmem>>, vector<32x640xbf16>
    %cst = arith.constant dense<0.000000e+00> : vector<16x640xf32>
    %5 = tpu.matmul %3, %4, %cst {dimension_numbers = #tpu.dot_dimension_numbers<[1], [0], [0], [1], [0, 0, 1, 1], [], []>} : vector<16x32xbf16>, vector<32x640xbf16>, vector<16x640xf32> -> vector<16x640xf32>
    %6 = arith.truncf %5 : vector<16x640xf32> to vector<16x640xbf16>
    %7 = vector.broadcast %0 : vector<1x640xbf16> to vector<16x640xbf16>
    %8 = arith.addf %6, %7 : vector<16x640xbf16>
    %cst_7 = arith.constant 1.000980e-02 : bf16
    %9 = vector.broadcast %cst_7 : bf16 to vector<16x640xbf16>
    %10 = arith.mulf %9, %8 : vector<16x640xbf16>
    %11 = arith.maximumf %8, %10 : vector<16x640xbf16>
    %c0_8 = arith.constant 0 : index
    %c0_9 = arith.constant 0 : index
    %12 = vector.load %arg4[%c0_8, %c0_9] : memref<640x640xbf16, #tpu.memory_space<vmem>>, vector<640x640xbf16>
    %cst_10 = arith.constant dense<0.000000e+00> : vector<16x640xf32>
    %13 = tpu.matmul %11, %12, %cst_10 {dimension_numbers = #tpu.dot_dimension_numbers<[1], [0], [0], [1], [0, 0, 1, 1], [], []>} : vector<16x640xbf16>, vector<640x640xbf16>, vector<16x640xf32> -> vector<16x640xf32>
    %14 = arith.truncf %13 : vector<16x640xf32> to vector<16x640xbf16>
    %15 = vector.broadcast %1 : vector<1x640xbf16> to vector<16x640xbf16>
    %16 = arith.addf %14, %15 : vector<16x640xbf16>
    %cst_11 = arith.constant 1.000980e-02 : bf16
    %17 = vector.broadcast %cst_11 : bf16 to vector<16x640xbf16>
    %18 = arith.mulf %17, %16 : vector<16x640xbf16>
    %19 = arith.maximumf %16, %18 : vector<16x640xbf16>
    %c0_12 = arith.constant 0 : index
    %c0_13 = arith.constant 0 : index
    %20 = vector.load %arg6[%c0_12, %c0_13] : memref<1x640xf32, #tpu.memory_space<vmem>>, vector<1x640xf32>
    %21 = arith.extf %19 : vector<16x640xbf16> to vector<16x640xf32>
    %22 = vector.broadcast %20 : vector<1x640xf32> to vector<16x640xf32>
    %23 = arith.mulf %21, %22 : vector<16x640xf32>
    %cst_14 = arith.constant dense<0.000000e+00> : vector<16xf32>
    %24 = vector.multi_reduction <add>, %23, %cst_14 [1] : vector<16x640xf32> to vector<16xf32>
    %25 = vector.shape_cast %24 : vector<16xf32> to vector<16x1xf32>
    %c0_15 = arith.constant 0 : index
    %c0_16 = arith.constant 0 : index
    %26 = vector.load %arg7[%c0_15, %c0_16] : memref<1x1xf32, #tpu.memory_space<vmem>>, vector<1x1xf32>
    %27 = vector.broadcast %26 : vector<1x1xf32> to vector<16x1xf32>
    %28 = arith.addf %25, %27 : vector<16x1xf32>
    %c0_17 = arith.constant 0 : index
    %c0_18 = arith.constant 0 : index
    %29 = vector.load %arg8[%c0_17, %c0_18] : memref<16x1xf32, #tpu.memory_space<vmem>>, vector<16x1xf32>
    tpu.vector_store %arg8[%c0_17, %c0_18], %28 {strides = array<i32>} : memref<16x1xf32, #tpu.memory_space<vmem>>, vector<16x1xf32>,
    return
  }
  func.func @transform_0(%arg0: i32) -> (i32, i32) {
    %c0_i32 = arith.constant 0 : i32
    %c0_i32_0 = arith.constant 0 : i32
    return %arg0, %c0_i32 : i32, i32
  }
  func.func @transform_1(%arg0: i32) -> (i32, i32) {
    %c0_i32 = arith.constant 0 : i32
    %c0_i32_0 = arith.constant 0 : i32
    %c0_i32_1 = arith.constant 0 : i32
    return %c0_i32, %c0_i32_0 : i32, i32
  }
  func.func @transform_2(%arg0: i32) -> (i32, i32) {
    %c0_i32 = arith.constant 0 : i32
    %c0_i32_0 = arith.constant 0 : i32
    %c0_i32_1 = arith.constant 0 : i32
    return %c0_i32, %c0_i32_0 : i32, i32
  }
  func.func @transform_3(%arg0: i32) -> (i32, i32) {
    %c0_i32 = arith.constant 0 : i32
    %c0_i32_0 = arith.constant 0 : i32
    %c0_i32_1 = arith.constant 0 : i32
    return %c0_i32, %c0_i32_0 : i32, i32
  }
  func.func @transform_4(%arg0: i32) -> (i32, i32) {
    %c0_i32 = arith.constant 0 : i32
    %c0_i32_0 = arith.constant 0 : i32
    %c0_i32_1 = arith.constant 0 : i32
    return %c0_i32, %c0_i32_0 : i32, i32
  }
  func.func @transform_5(%arg0: i32) -> (i32, i32) {
    %c0_i32 = arith.constant 0 : i32
    %c0_i32_0 = arith.constant 0 : i32
    %c0_i32_1 = arith.constant 0 : i32
    return %c0_i32, %c0_i32_0 : i32, i32
  }
  func.func @transform_6(%arg0: i32) -> (i32, i32) {
    %c0_i32 = arith.constant 0 : i32
    %c0_i32_0 = arith.constant 0 : i32
    %c0_i32_1 = arith.constant 0 : i32
    return %c0_i32, %c0_i32_0 : i32, i32
  }
  func.func @transform_7(%arg0: i32) -> (i32, i32) {
    %c0_i32 = arith.constant 0 : i32
    %c0_i32_0 = arith.constant 0 : i32
    return %arg0, %c0_i32 : i32, i32
  }
}

</mosaic_0001>

<bundles_post_ra>
// kernel: disnet_forward.1
= control target key start
LH: loop header
LB: loop body
LE: loop exit
PB: predicated region body
PF: predicated region fallthrough
CT: control target
= control target key end

     0   :  { %s3121_s0 = inlined_call_operand.hbm [shape: f32[16,32], index: 0, kind: input, shape index: {}]   ;;  %s3122_s1 = inlined_call_operand.hbm [shape: bf16[32,640], index: 1, kind: input, shape index: {}]   ;;  %s3123_s2 = inlined_call_operand.vmem [shape: bf16[1,640], index: 2, kind: input, shape index: {}]   ;;  %s3124_s3 = inlined_call_operand.hbm [shape: bf16[640,640], index: 3, kind: input, shape index: {}]   ;;  %s3125_s4 = inlined_call_operand.vmem [shape: bf16[1,640], index: 4, kind: input, shape index: {}]   ;;  %s3126_s5 = inlined_call_operand.vmem [shape: f32[1,640], index: 5, kind: input, shape index: {}]   ;;  %s3127_s6 = inlined_call_operand.<no memory space> [shape: f32[1,1], index: 6, kind: input, shape index: {}]   ;;  %s3128_s7 = inlined_call_operand.vmem [shape: f32[16,1], index: 7, kind: output, shape index: {}]  }
   0x1   :  { %v12_v0 = vstv %s3127_s6 }
   0x2   :  { %13 = vst [vmem:[#allocation2] sm:$0x1] %v12_v0 }
   0x3   :  { %14 = vsyncpa [#allocation4], 0 }
   0x4   :  { %15 = vsyncpa [#allocation6], 0  ;;  %s2890_s26 = smov [#allocation5]   ;;  %s2820_s30 = scalar_lea.hbm %s3122_s1, 1280 }
   0x5   :  { %s33_s27 = sshll.u32 %s2890_s26, 4  ;;  %p2821_p0 = scmp.ne.s32.totalorder %s3122_s1, %s2820_s30  ;;  %s34_s27 = int_to_ptr.vmem [resolvable:$true] %s33_s27 }
   0x6   :  { %p2824_p1 = scmp.lt.u32.totalorder %s2820_s30, %s3122_s1 }
   0x8   :  { %p2826_p2 = pnand %p2824_p1, %p2821_p0 }
   0xa   :  { %2829 = shalt.err (!%p2826_p2)
}
   0xb   :  { %s2830_s6 = scalar_lea.vmem %s34_s27, 1280  ;;  %p2835_p4 = scmp.lt.s32.totalorder %s34_s27, %s34_s27 }
   0xc   :  { %p2831_p3 = scmp.ne.s32.totalorder %s34_s27, %s2830_s6  ;;  %p2836_p5 = scmp.lt.s32.totalorder %s2830_s6, %s2830_s6 }
   0xe   :  { %p2837_p6 = por %p2836_p5, %p2835_p4 }
  0x10   :  { %p2838_p7 = pnand %p2837_p6, %p2831_p3 }
  0x12   :  { %2841 = shalt.err (!%p2838_p7)
}
  0x13   :  { %s2891_s12 = smov 320   ;;  %s2892_s13 = smov 20  }
  0x14   :  { %39 = dma.hbm_to_vmem [thread:$0]  %s3122_s1, 1280, %s34_s27, [#allocation6], %s2891_s12, %s2891_s12, %s2892_s13  }
  0x15   :  { %s2893_s16 = smov [#allocation3]   ;;  %s2842_s20 = scalar_lea.hbm %s3121_s0, 256 }
  0x16   :  { %s21_s17 = sshll.u32 %s2893_s16, 4  ;;  %p2843_p8 = scmp.ne.s32.totalorder %s3121_s0, %s2842_s20  ;;  %s22_s17 = int_to_ptr.vmem [resolvable:$true] %s21_s17 }
  0x17   :  { %p2846_p9 = scmp.lt.u32.totalorder %s2842_s20, %s3121_s0 }
  0x19   :  { %p2848_p10 = pnand %p2846_p9, %p2843_p8 }
  0x1b   :  { %2851 = shalt.err (!%p2848_p10)
}
  0x1c   :  { %s2852_s25 = scalar_lea.vmem %s22_s17, 256  ;;  %p2857_p12 = scmp.lt.s32.totalorder %s22_s17, %s22_s17 }
  0x1d   :  { %p2853_p11 = scmp.ne.s32.totalorder %s22_s17, %s2852_s25  ;;  %p2858_p13 = scmp.lt.s32.totalorder %s2852_s25, %s2852_s25 }
  0x1f   :  { %p2859_p0 = por %p2858_p13, %p2857_p12 }
  0x21   :  { %p2860_p1 = pnand %p2859_p0, %p2853_p11 }
  0x23   :  { %2863 = shalt.err (!%p2860_p1)
}
  0x24   :  { %s2894_s1 = smov 128   ;;  %s2895_s26 = smov 8  }
  0x25   :  { %27 = dma.hbm_to_vmem [thread:$0]  %s3121_s0, 256, %s22_s17, [#allocation4], %s2894_s1, %s2894_s1, %s2895_s26  }
  0x26   :  { %s2896_s29 = smov [#allocation7]   ;;  %s2864_s10 = scalar_lea.hbm %s3124_s3, 25600 }
  0x27   :  { %s47_s30 = sshll.u32 %s2896_s29, 4  ;;  %p2865_p2 = scmp.ne.s32.totalorder %s3124_s3, %s2864_s10  ;;  %s48_s30 = int_to_ptr.vmem [resolvable:$true] %s47_s30 }
  0x28   :  { %p2868_p3 = scmp.lt.u32.totalorder %s2864_s10, %s3124_s3 }
  0x2a   :  { %p2870_p4 = pnand %p2868_p3, %p2865_p2 }
  0x2c   :  { %2873 = shalt.err (!%p2870_p4)
}
  0x2d   :  { %s2874_s16 = scalar_lea.vmem %s48_s30, 25600  ;;  %p2879_p6 = scmp.lt.s32.totalorder %s48_s30, %s48_s30 }
  0x2e   :  { %p2875_p5 = scmp.ne.s32.totalorder %s48_s30, %s2874_s16  ;;  %p2880_p7 = scmp.lt.s32.totalorder %s2874_s16, %s2874_s16 }
  0x30   :  { %p2881_p8 = por %p2880_p7, %p2879_p6 }
  0x32   :  { %p2882_p9 = pnand %p2881_p8, %p2875_p5 }
  0x34   :  { %2885 = shalt.err (!%p2882_p9)
}
  0x35   :  { %53 = dma.hbm_to_vmem [thread:$0]  %s3124_s3, 25600, %s48_s30, [#allocation6], %s2891_s12, %s2891_s12, %s2892_s13  }
  0x36   :  { %2886 = dma.done.wait [#allocation4], 256  }
  0x37   :  { %2887 = vsyncadd [#allocation4], 4294967040 }
  0x38   :  { %2888 = dma.done.wait [#allocation6], 26880  }
  0x39   :  { %2889 = vsyncadd [#allocation6], 4294940416  ;;  %v2897_v1 = vmov 0   ;;  %v2524_v2 = vld [vmem:[#allocation5 + $0x4] ss:$20 sps:$4 sm:$0xff]   ;;  %v73_v6 = vld [vmem:[#allocation3] sm:$0xff] }
  0x3a   :  { %176 = vmatprep.mubr.bf16.mxu0 %v2897_v1  ;;  %v2526_v3 = vld [vmem:[#allocation5] ss:$20 sps:$4 sm:$0xff]   ;;  %144 = vmatprep.subr.bf16.mxu0 %v2524_v2  ;;  %v2529_v5 = vld [vmem:[#allocation5 + $0x28] ss:$20 sps:$4 sm:$0xff]   ;;  %vm140_vm0 = vcmask 261120   ;;  %v2898_v19 = vmov 0.0  }
  0x3b   :  { %v2527_v4 = vld [vmem:[#allocation5 + $0x2c] ss:$20 sps:$4 sm:$0xff]   ;;  %145 = vmatpush1.bf16.msra.mxu0 %v2526_v3  ;;  %v74_v7 = vld [vmem:[#allocation3 + $0x8] sm:$0xff]  ;;  %v2535_v11 = vld [vmem:[#allocation5 + $0x34] ss:$20 sps:$4 sm:$0xff]   ;;  %vm2899_vm1 = vmmov 0  }
  0x3c   :  { %146 = vmatprep.subr.bf16.mxu0 %v2527_v4  ;;  %v2532_v8 = vld [vmem:[#allocation5 + $0xc] ss:$20 sps:$4 sm:$0xff]   ;;  %v75_v9 = vpack.c.bf16 %v74_v7, %v73_v6  ;;  %v2530_v10 = vld [vmem:[#allocation5 + $0x8] ss:$20 sps:$4 sm:$0xff]   ;;  %v2533_v13 = vld [vmem:[#allocation5 + $0x30] ss:$20 sps:$4 sm:$0xff]  }
  0x3d   :  { %v2538_v12 = vld [vmem:[#allocation7 + $0x4] ss:$20 sps:$4 sm:$0xff]   ;;  %v2543_v14 = vld [vmem:[#allocation7] ss:$20 sps:$4 sm:$0xff]   ;;  %v2549_v16 = vld [vmem:[#allocation7 + $0x28] ss:$20 sps:$4 sm:$0xff]  }
  0x3e   :  { %1646 = vmatprep.subr.bf16.mxu1 %v2538_v12  ;;  %v2544_v15 = vld [vmem:[#allocation7 + $0x2c] ss:$20 sps:$4 sm:$0xff]   ;;  %v2550_v17 = vld [vmem:[#allocation7 + $0x54] ss:$20 sps:$4 sm:$0xff]   ;;  %v2555_v20 = vld [vmem:[#allocation7 + $0x50] ss:$20 sps:$4 sm:$0xff]  }
  0x3f   :  { %147 = vmatpush1.bf16.msra.mxu0 %v2529_v5  ;;  %1647 = vmatpush1.bf16.msra.mxu1 %v2543_v14  ;;  %v2536_v18 = vld [vmem:[#allocation5 + $0x10] ss:$20 sps:$4 sm:$0xff]   ;;  %v2556_v21 = vld [vmem:[#allocation7 + $0x7c] ss:$20 sps:$4 sm:$0xff]   ;;  %v2561_v24 = vld [vmem:[#allocation7 + $0x78] ss:$20 sps:$4 sm:$0xff]  }
  0x40   :  { %187 = vmatprep.subr.bf16.mxu0 %v2532_v8  ;;  %1648 = vmatprep.subr.bf16.mxu1 %v2544_v15  ;;  %v2537_v22 = vld [vmem:[#allocation5 + $0x38] ss:$20 sps:$4 sm:$0xff]   ;;  %v2542_v23 = vld [vmem:[#allocation7 + $0xc] ss:$20 sps:$4 sm:$0xff]   ;;  %v2562_v25 = vld [vmem:[#allocation7 + $0xa4] ss:$20 sps:$4 sm:$0xff]  }
  0x41   :  { %v2540_v26 = vld [vmem:[#allocation7 + $0x8] ss:$20 sps:$4 sm:$0xff]   ;;  %v2567_v28 = vld [vmem:[#allocation7 + $0xa0] ss:$20 sps:$4 sm:$0xff]   ;;  %v2546_v30 = vld [vmem:[#allocation7 + $0x30] ss:$20 sps:$4 sm:$0xff]  }
  0x42   :  { %2209 = vmatmul.mubr.msk.bf16.vlgmr.msra.gmra.mrb[0].mxu0 %vm140_vm0, %v75_v9  ;;  %v2548_v27 = vld [vmem:[#allocation7 + $0x34] ss:$20 sps:$4 sm:$0xff]   ;;  %v2568_v29 = vld [vmem:[#allocation7 + $0xcc] ss:$20 sps:$4 sm:$0xff]   ;;  %v2554_v31 = vld [vmem:[#allocation7 + $0x5c] ss:$20 sps:$4 sm:$0xff]  }
  0x43   :  { %188 = vmatpush1.bf16.msra.mxu0 %v2530_v10  ;;  %219 = vmatprep.mubr.bf16.mxu0 %v2897_v1  ;;  %v2573_v32 = vld [vmem:[#allocation7 + $0xc8] ss:$20 sps:$4 sm:$0xff]   ;;  %v2552_v34 = vld [vmem:[#allocation7 + $0x58] ss:$20 sps:$4 sm:$0xff]   ;;  %v2579_v36 = vld [vmem:[#allocation7 + $0xf0] ss:$20 sps:$4 sm:$0xff]  }
  0x44   :  { %189 = vmatprep.subr.bf16.mxu0 %v2535_v11  ;;  %1649 = vmatpush1.bf16.msra.mxu1 %v2549_v16  ;;  %v2574_v33 = vld [vmem:[#allocation7 + $0xf4] ss:$20 sps:$4 sm:$0xff]   ;;  %v2560_v35 = vld [vmem:[#allocation7 + $0x84] ss:$20 sps:$4 sm:$0xff]   ;;  %v2580_v37 = vld [vmem:[#allocation7 + $0x11c] ss:$20 sps:$4 sm:$0xff]  }
  0x45   :  { %1650 = vmatprep.subr.bf16.mxu1 %v2550_v17  ;;  %v2558_v38 = vld [vmem:[#allocation7 + $0x80] ss:$20 sps:$4 sm:$0xff]   ;;  %v2585_v40 = vld [vmem:[#allocation7 + $0x118] ss:$20 sps:$4 sm:$0xff]   ;;  %v2564_v42 = vld [vmem:[#allocation7 + $0xa8] ss:$20 sps:$4 sm:$0xff]  }
  0x46   :  { %v2566_v39 = vld [vmem:[#allocation7 + $0xac] ss:$20 sps:$4 sm:$0xff]   ;;  %v2586_v41 = vld [vmem:[#allocation7 + $0x144] ss:$20 sps:$4 sm:$0xff]   ;;  %v2572_v43 = vld [vmem:[#allocation7 + $0xd4] ss:$20 sps:$4 sm:$0xff]  }
  0x47   :  { %190 = vmatpush1.bf16.msra.mxu0 %v2533_v13  ;;  %v2591_v44 = vld [vmem:[#allocation7 + $0x140] ss:$20 sps:$4 sm:$0xff]   ;;  %v2570_v45 = vld [vmem:[#allocation7 + $0xd0] ss:$20 sps:$4 sm:$0xff]   ;;  %v2597_v48 = vld [vmem:[#allocation7 + $0x168] ss:$20 sps:$4 sm:$0xff]  }
  0x48   :  { %2469 = vmatprep.subr.bf16.mxu0 %v2898_v19  ;;  %1651 = vmatpush1.bf16.msra.mxu1 %v2555_v20  ;;  %v2592_v46 = vld [vmem:[#allocation7 + $0x16c] ss:$20 sps:$4 sm:$0xff]   ;;  %v2578_v47 = vld [vmem:[#allocation7 + $0xfc] ss:$20 sps:$4 sm:$0xff]   ;;  %v2598_v49 = vld [vmem:[#allocation7 + $0x194] ss:$20 sps:$4 sm:$0xff]  }
  0x49   :  { %1652 = vmatprep.subr.bf16.mxu1 %v2556_v21  ;;  %v2576_v50 = vld [vmem:[#allocation7 + $0xf8] ss:$20 sps:$4 sm:$0xff]   ;;  %v2603_v52 = vld [vmem:[#allocation7 + $0x190] ss:$20 sps:$4 sm:$0xff]   ;;  %v2582_v54 = vld [vmem:[#allocation7 + $0x120] ss:$20 sps:$4 sm:$0xff]  }
  0x4a   :  { %2210 = vmatmul.mubr.msk.bf16.vlgmr.msra.gmra.mrb[4].mxu0 %vm140_vm0, %v75_v9  ;;  %v2584_v51 = vld [vmem:[#allocation7 + $0x124] ss:$20 sps:$4 sm:$0xff]   ;;  %v2604_v53 = vld [vmem:[#allocation7 + $0x1bc] ss:$20 sps:$4 sm:$0xff]   ;;  %v2590_v55 = vld [vmem:[#allocation7 + $0x14c] ss:$20 sps:$4 sm:$0xff]  }
  0x4b   :  { %2470 = vmatpush3.bf16.msra.mxu0 %v2536_v18  ;;  %2473 = vmatprep.mubr.msk.bf16.mxu0 %vm2899_vm1, %v2898_v19  ;;  %v2609_v56 = vld [vmem:[#allocation7 + $0x1b8] ss:$20 sps:$4 sm:$0xff]   ;;  %v2588_v58 = vld [vmem:[#allocation7 + $0x148] ss:$20 sps:$4 sm:$0xff]   ;;  %v2615_v60 = vld [vmem:[#allocation7 + $0x1e0] ss:$20 sps:$4 sm:$0xff]  }
  0x4c   :  { %2471 = vmatprep.subr.bf16.mxu0 %v2898_v19  ;;  %1653 = vmatpush1.bf16.msra.mxu1 %v2561_v24  ;;  %v2610_v57 = vld [vmem:[#allocation7 + $0x1e4] ss:$20 sps:$4 sm:$0xff]   ;;  %v2596_v59 = vld [vmem:[#allocation7 + $0x174] ss:$20 sps:$4 sm:$0xff]   ;;  %v2602_v62 = vld [vmem:[#allocation7 + $0x19c] ss:$20 sps:$4 sm:$0xff]  }
  0x4d   :  { %1654 = vmatprep.subr.bf16.mxu1 %v2562_v25  ;;  %v2594_v61 = vld [vmem:[#allocation7 + $0x170] ss:$20 sps:$4 sm:$0xff]   ;;  %v2600_v63 = vld [vmem:[#allocation7 + $0x198] ss:$20 sps:$4 sm:$0xff]   ;;  %v2606_v2 = vld [vmem:[#allocation7 + $0x1c0] ss:$20 sps:$4 sm:$0xff]  }
  0x4e   :  { %v2608_v0 = vld [vmem:[#allocation7 + $0x1c4] ss:$20 sps:$4 sm:$0xff]   ;;  %v2614_v3 = vld [vmem:[#allocation7 + $0x1ec] ss:$20 sps:$4 sm:$0xff]   ;;  %v2612_v4 = vld [vmem:[#allocation7 + $0x1e8] ss:$20 sps:$4 sm:$0xff]  }
  0x4f   :  { %2472 = vmatpush3.bf16.msra.mxu0 %v2537_v22  ;;  %v2616_v5 = vld [vmem:[#allocation7 + $0x20c] ss:$20 sps:$4 sm:$0xff]   ;;  %v2620_v6 = vld [vmem:[#allocation7 + $0x214] ss:$20 sps:$4 sm:$0xff]   ;;  %v2618_v7 = vld [vmem:[#allocation7 + $0x210] ss:$20 sps:$4 sm:$0xff]   ;;  %v281_v22 = vlaneseq }
  0x50   :  { %1775 = vmatprep.subr.bf16.mxu0 %v2542_v23  ;;  %1655 = vmatpush1.bf16.msra.mxu1 %v2567_v28  ;;  %v2621_v8 = vld [vmem:[#allocation7 + $0x208] ss:$20 sps:$4 sm:$0xff]   ;;  %v2624_v11 = vld [vmem:[#allocation7 + $0x238] ss:$20 sps:$4 sm:$0xff]   ;;  %v2627_v12 = vld [vmem:[#allocation7 + $0x230] ss:$20 sps:$4 sm:$0xff]  }
  0x51   :  { %1656 = vmatprep.subr.bf16.mxu1 %v2568_v29  ;;  %v2626_v10 = vld [vmem:[#allocation7 + $0x23c] ss:$20 sps:$4 sm:$0xff]   ;;  %v2632_v14 = vld [vmem:[#allocation7 + $0x264] ss:$20 sps:$4 sm:$0xff]   ;;  %v2630_v15 = vld [vmem:[#allocation7 + $0x260] ss:$20 sps:$4 sm:$0xff]  }
  0x52   :  { %2474 = vmatmul.mubr.msk.bf16.vlgmr.msra.gmra.mrb[8].mxu0 %vm140_vm0, %v75_v9  ;;  %v2622_v9 = vld [vmem:[#allocation7 + $0x234] ss:$20 sps:$4 sm:$0xff]   ;;  %v2628_v13 = vld [vmem:[#allocation7 + $0x25c] ss:$20 sps:$4 sm:$0xff]   ;;  %v2633_v16 = vld [vmem:[#allocation7 + $0x258] ss:$20 sps:$4 sm:$0xff]  }
  0x53   :  { %1776 = vmatpush1.bf16.msra.mxu0 %v2540_v26  ;;  %v2636_v17 = vld [vmem:[#allocation7 + $0x284] ss:$20 sps:$4 sm:$0xff]   ;;  %v2639_v18 = vld [vmem:[#allocation7 + $0x28c] ss:$20 sps:$4 sm:$0xff]   ;;  %v2900_v20 = vmov 1966171168  }
  0x54   :  { %1777 = vmatprep.subr.bf16.mxu0 %v2548_v27  ;;  %1657 = vmatpush1.bf16.msra.mxu1 %v2573_v32  ;;  %v279_v21 = vunpack.c.l.s4 %v2900_v20  ;;  %v2995_v24 = vshrl.u32 %v281_v22, 7  ;;  %v3003_v26 = vld [vmem:[%s3123_s2] sm:$0x1f]  ;;  %v2669_v22 = vld [vmem:[#allocation7 + $0x354] ss:$20 sps:$4 sm:$0xff]   ;;  %vm2190_vm2 = vcmask 7168  }
  0x55   :  { %1658 = vmatprep.subr.bf16.mxu1 %v2574_v33  ;;  %v2661_v20 = vld [vmem:[#allocation7 + $0x328] ss:$20 sps:$4 sm:$0xff]  }
  0x56   :  { %v280_v23 = vunpack.c.0.s8 %v279_v21  ;;  %v3014_v32 = vsub.s32 0, %v2995_v24  ;;  %v2666_v21 = vld [vmem:[#allocation7 + $0x34c] ss:$20 sps:$4 sm:$0xff]  }
  0x57   :  { %1778 = vmatpush1.bf16.msra.mxu0 %v2546_v30 }
  0x58   :  { %1779 = vmatprep.subr.bf16.mxu0 %v2554_v31  ;;  %1659 = vmatpush1.bf16.msra.mxu1 %v2579_v36  ;;  %v2998_v25 = vsub.s32 %v280_v23, %v2995_v24  ;;  %v2664_v23 = vld [vmem:[#allocation7 + $0x348] ss:$20 sps:$4 sm:$0xff]  }
  0x59   :  { %1660 = vmatprep.subr.bf16.mxu1 %v2580_v37 }
  0x5a   :  { %v284_v27 = vrot.slane %v3003_v26, %v2998_v25 }
  0x5b   :  { %1780 = vmatpush1.bf16.msra.mxu0 %v2552_v34 }
  0x5c   :  { %1781 = vmatprep.subr.bf16.mxu0 %v2560_v35  ;;  %1661 = vmatpush1.bf16.msra.mxu1 %v2585_v40  ;;  %v292_v28 = vcombine.high %v284_v27, %v284_v27  ;;  %v3008_v29 = vrot.slane %v284_v27, %v2998_v25  ;;  %v2667_v27 = vld [vmem:[#allocation7 + $0x350] ss:$20 sps:$4 sm:$0xff]  }
  0x5d   :  { %1662 = vmatprep.subr.bf16.mxu1 %v2586_v41 }
  0x5e   :  { %v313_v30 = vrot.slane %v292_v28, %v2998_v25  ;;  %v317_v31 = vpack.i.b16 %v3008_v29, %v3008_v29  ;;  %v2672_v28 = vld [vmem:[#allocation7 + $0x374] ss:$20 sps:$4 sm:$0xff]  }
  0x5f   :  { %1782 = vmatpush1.bf16.msra.mxu0 %v2558_v38 }
  0x60   :  { %1783 = vmatprep.subr.bf16.mxu0 %v2566_v39  ;;  %1663 = vmatpush1.bf16.msra.mxu1 %v2591_v44  ;;  %v324_v33 = vpack.i.b16 %v313_v30, %v313_v30  ;;  %v322_v36 = vrot.slane %v317_v31, %v3014_v32  ;;  %v315_v39 = vcombine.high %v313_v30, %v313_v30  ;;  %v2675_v30 = vld [vmem:[#allocation7 + $0x37c] ss:$20 sps:$4 sm:$0xff]  }
  0x61   :  { %1664 = vmatprep.subr.bf16.mxu1 %v2592_v46  ;;  %v2670_v31 = vld [vmem:[#allocation7 + $0x370] ss:$20 sps:$4 sm:$0xff]  }
  0x62   :  { %v329_v38 = vrot.slane %v324_v33, %v3014_v32  ;;  %v2673_v33 = vld [vmem:[#allocation7 + $0x378] ss:$20 sps:$4 sm:$0xff]  }
  0x63   :  { %1784 = vmatpush1.bf16.msra.mxu0 %v2564_v42 }
  0x64   :  { %1785 = vmatprep.subr.bf16.mxu0 %v2572_v43  ;;  %1665 = vmatpush1.bf16.msra.mxu1 %v2597_v48 }
  0x65   :  { %1666 = vmatprep.subr.bf16.mxu1 %v2598_v49 }
  0x67   :  { %1786 = vmatpush1.bf16.msra.mxu0 %v2570_v45  ;;  %v338_v45 = vpack.i.b16 %v315_v39, %v315_v39  ;;  %v2687_v39 = vld [vmem:[#allocation7 + $0x3cc] ss:$20 sps:$4 sm:$0xff]  }
  0x68   :  { %1787 = vmatprep.subr.bf16.mxu0 %v2578_v47  ;;  %1667 = vmatpush1.bf16.msra.mxu1 %v2603_v52  ;;  %v2637_v52 = vld [vmem:[#allocation7 + $0x288] ss:$20 sps:$4 sm:$0xff]  }
  0x69   :  { %1668 = vmatprep.subr.bf16.mxu1 %v2604_v53 }
  0x6b   :  { %1788 = vmatpush1.bf16.msra.mxu0 %v2576_v50 }
  0x6c   :  { %1789 = vmatprep.subr.bf16.mxu0 %v2584_v51  ;;  %1669 = vmatpush1.bf16.msra.mxu1 %v2609_v56  ;;  %v2634_v51 = vld [vmem:[#allocation7 + $0x280] ss:$20 sps:$4 sm:$0xff]  }
  0x6d   :  { %1670 = vmatprep.subr.bf16.mxu1 %v2610_v57  ;;  %v2642_v56 = vld [vmem:[#allocation7 + $0x2ac] ss:$20 sps:$4 sm:$0xff]   ;;  %v2645_v57 = vld [vmem:[#allocation7 + $0x2b4] ss:$20 sps:$4 sm:$0xff]  }
  0x6f   :  { %1790 = vmatpush1.bf16.msra.mxu0 %v2582_v54  ;;  %v343_v54 = vrot.slane %v338_v45, %v3014_v32  ;;  %v2691_v45 = vld [vmem:[#allocation7 + $0x3f0] ss:$20 sps:$4 sm:$0xff]  }
  0x70   :  { %1791 = vmatprep.subr.bf16.mxu0 %v2590_v55  ;;  %1671 = vmatpush1.bf16.msra.mxu1 %v2615_v60 }
  0x71   :  { %1672 = vmatprep.subr.bf16.mxu1 %v2616_v5 }
  0x73   :  { %1792 = vmatpush1.bf16.msra.mxu0 %v2588_v58 }
  0x74   :  { %1793 = vmatprep.subr.bf16.mxu0 %v2596_v59  ;;  %1673 = vmatpush1.bf16.msra.mxu1 %v2621_v8 }
  0x75   :  { %1674 = vmatprep.subr.bf16.mxu1 %v2622_v9 }
  0x77   :  { %1794 = vmatpush1.bf16.msra.mxu0 %v2594_v61  ;;  %v2640_v61 = vld [vmem:[#allocation7 + $0x2a8] ss:$20 sps:$4 sm:$0xff]  }
  0x78   :  { %1795 = vmatprep.subr.bf16.mxu0 %v2602_v62  ;;  %1675 = vmatpush1.bf16.msra.mxu1 %v2627_v12  ;;  %v2643_v62 = vld [vmem:[#allocation7 + $0x2b0] ss:$20 sps:$4 sm:$0xff]  }
  0x79   :  { %1676 = vmatprep.subr.bf16.mxu1 %v2628_v13 }
  0x7b   :  { %1796 = vmatpush1.bf16.msra.mxu0 %v2600_v63 }
  0x7c   :  { %1797 = vmatprep.subr.bf16.mxu0 %v2608_v0  ;;  %1677 = vmatpush1.bf16.msra.mxu1 %v2633_v16  ;;  %v2648_v0 = vld [vmem:[#allocation7 + $0x2d4] ss:$20 sps:$4 sm:$0xff]   ;;  %v2660_v16 = vld [vmem:[#allocation7 + $0x324] ss:$20 sps:$4 sm:$0xff]  }
  0x7d   :  { %1689 = vmatprep.subr.bf16.mxu1 %v2636_v17  ;;  %v2663_v17 = vld [vmem:[#allocation7 + $0x32c] ss:$20 sps:$4 sm:$0xff]  }
  0x7f   :  { %1798 = vmatpush1.bf16.msra.mxu0 %v2606_v2  ;;  %v2651_v2 = vld [vmem:[#allocation7 + $0x2dc] ss:$20 sps:$4 sm:$0xff]  }
  0x80   :  { %1799 = vmatprep.subr.bf16.mxu0 %v2614_v3 }
  0x83   :  { %1800 = vmatpush1.bf16.msra.mxu0 %v2612_v4 }
  0x84   :  { %1801 = vmatprep.subr.bf16.mxu0 %v2620_v6  ;;  %v2646_v6 = vld [vmem:[#allocation7 + $0x2d0] ss:$20 sps:$4 sm:$0xff]  }
  0x87   :  { %1802 = vmatpush1.bf16.msra.mxu0 %v2618_v7  ;;  %v2649_v7 = vld [vmem:[#allocation7 + $0x2d8] ss:$20 sps:$4 sm:$0xff]  }
  0x88   :  { %1803 = vmatprep.subr.bf16.mxu0 %v2626_v10  ;;  %v2654_v10 = vld [vmem:[#allocation7 + $0x2fc] ss:$20 sps:$4 sm:$0xff]  }
  0x8b   :  { %1804 = vmatpush1.bf16.msra.mxu0 %v2624_v11  ;;  %v2657_v11 = vld [vmem:[#allocation7 + $0x304] ss:$20 sps:$4 sm:$0xff]  }
  0x8c   :  { %1805 = vmatprep.subr.bf16.mxu0 %v2632_v14  ;;  %v2652_v14 = vld [vmem:[#allocation7 + $0x2f8] ss:$20 sps:$4 sm:$0xff]  }
  0x8f   :  { %1806 = vmatpush1.bf16.msra.mxu0 %v2630_v15  ;;  %v2655_v15 = vld [vmem:[#allocation7 + $0x300] ss:$20 sps:$4 sm:$0xff]  }
  0x90   :  { %1818 = vmatprep.subr.bf16.mxu0 %v2639_v18  ;;  %v2658_v18 = vld [vmem:[#allocation7 + $0x320] ss:$20 sps:$4 sm:$0xff]  }
 0x115   :  { %v178_v34 = vpop.f32.mrb[0].mxu0 }
 0x116   :  { %v180_v35 = vpop.f32.mrb[1].mxu0 }
 0x117   :  { %v182_v37 = vpop.f32.mrb[2].mxu0 }
 0x118   :  { %v271_v40 = vpack.c.bf16 %v182_v37, %v178_v34  ;;  %v184_v41 = vpop.f32.mrb[3].mxu0  ;;  %v2678_v34 = vld [vmem:[#allocation7 + $0x39c] ss:$20 sps:$4 sm:$0xff]   ;;  %v2679_v37 = vld [vmem:[#allocation7 + $0x3a0] ss:$20 sps:$4 sm:$0xff]  }
 0x119   :  { %v272_v42 = vpack.c.bf16 %v184_v41, %v180_v35  ;;  %v2681_v35 = vld [vmem:[#allocation7 + $0x3a4] ss:$20 sps:$4 sm:$0xff]   ;;  %v2685_v41 = vld [vmem:[#allocation7 + $0x3c8] ss:$20 sps:$4 sm:$0xff]  }
 0x11a   :  { %v351_v43 = vadd.bf16 %v322_v36, %v271_v40  ;;  %v2676_v36 = vld [vmem:[#allocation7 + $0x398] ss:$20 sps:$4 sm:$0xff]   ;;  %v2682_v40 = vld [vmem:[#allocation7 + $0x3c0] ss:$20 sps:$4 sm:$0xff]  }
 0x11b   :  { %v352_v44 = vadd.bf16 %v329_v38, %v272_v42  ;;  %v2684_v38 = vld [vmem:[#allocation7 + $0x3c4] ss:$20 sps:$4 sm:$0xff]   ;;  %v2690_v42 = vld [vmem:[#allocation7 + $0x3ec] ss:$20 sps:$4 sm:$0xff]  }
 0x11c   :  { %v356_v46 = vmul.bf16 1009007652, %v351_v43 }
 0x11d   :  { %v357_v47 = vmul.bf16 1009007652, %v352_v44  ;;  %v3018_v48 = vpop.f32.mrb[4].mxu0 }
 0x11e   :  { %v223_v49 = vpop.f32.mrb[5].mxu0  ;;  %v3025_v55 = vmax.bf16 %v356_v46, %v351_v43  ;;  %v2693_v43 = vld [vmem:[#allocation7 + $0x3f4] ss:$20 sps:$4 sm:$0xff]  }
 0x11f   :  { %v3020_v50 = vmax.bf16 %v357_v47, %v352_v44  ;;  %v3022_v53 = vpop.f32.mrb[6].mxu0  ;;  %v2688_v44 = vld [vmem:[#allocation7 + $0x3e8] ss:$20 sps:$4 sm:$0xff]  }
 0x120   :  { %v273_v58 = vpack.c.bf16 %v3022_v53, %v3018_v48  ;;  %v227_v59 = vpop.f32.mrb[7].mxu0  ;;  %v2696_v46 = vld [vmem:[#allocation7 + $0x414] ss:$20 sps:$4 sm:$0xff]   ;;  %v2699_v47 = vld [vmem:[#allocation7 + $0x41c] ss:$20 sps:$4 sm:$0xff]  }
 0x121   :  { %1678 = vmatprep.mubr.bf16.mxu1 %v3020_v50  ;;  %1807 = vmatprep.mubr.bf16.mxu0 %v3020_v50  ;;  %v274_v60 = vpack.c.bf16 %v227_v59, %v223_v49  ;;  %v2694_v49 = vld [vmem:[#allocation7 + $0x410] ss:$20 sps:$4 sm:$0xff]   ;;  %v2738_v48 = vld [vmem:[#allocation7 + $0x52c] ss:$20 sps:$4 sm:$0xff]   ;;  %v2741_v53 = vld [vmem:[#allocation7 + $0x534] ss:$20 sps:$4 sm:$0xff]  }
 0x122   :  { %1679 = vmatmul.mubr.bf16.vlgmr.msra.gmra.mrb[0].mxu1 %v3025_v55  ;;  %1808 = vmatmul.mubr.bf16.vlgmr.msra.gmra.mrb[12].mxu0 %v3025_v55  ;;  %v2708_v59 = vld [vmem:[#allocation7 + $0x464] ss:$20 sps:$4 sm:$0xff]  }
 0x123   :  { %1690 = vmatpush1.bf16.msra.mxu1 %v2634_v51  ;;  %1819 = vmatpush1.bf16.msra.mxu0 %v2637_v52  ;;  %v354_v63 = vadd.bf16 %v343_v54, %v274_v60  ;;  %v2697_v51 = vld [vmem:[#allocation7 + $0x418] ss:$20 sps:$4 sm:$0xff]   ;;  %v2702_v52 = vld [vmem:[#allocation7 + $0x43c] ss:$20 sps:$4 sm:$0xff]  }
 0x124   :  { %1691 = vmatprep.subr.bf16.mxu1 %v2642_v56  ;;  %1820 = vmatprep.subr.bf16.mxu0 %v2645_v57  ;;  %v2705_v54 = vld [vmem:[#allocation7 + $0x444] ss:$20 sps:$4 sm:$0xff]   ;;  %v2703_v57 = vld [vmem:[#allocation7 + $0x440] ss:$20 sps:$4 sm:$0xff]  }
 0x125   :  { %v359_v3 = vmul.bf16 1009007652, %v354_v63  ;;  %v3033_v4 = vpop.f32.mrb[8].mxu0  ;;  %v2700_v56 = vld [vmem:[#allocation7 + $0x438] ss:$20 sps:$4 sm:$0xff]  }
 0x126   :  { %v2475_v5 = vpop.f32.mrb[9].mxu0  ;;  %v2711_v60 = vld [vmem:[#allocation7 + $0x46c] ss:$20 sps:$4 sm:$0xff]  }
 0x127   :  { %1692 = vmatpush1.bf16.msra.mxu1 %v2640_v61  ;;  %1821 = vmatpush1.bf16.msra.mxu0 %v2643_v62  ;;  %v3035_v8 = vmax.bf16 %v359_v3, %v354_v63  ;;  %v3037_v9 = vpop.f32.mrb[10].mxu0  ;;  %v314_v61 = vcombine.high %v3008_v29, %v3008_v29  ;;  %v2706_v62 = vld [vmem:[#allocation7 + $0x460] ss:$20 sps:$4 sm:$0xff]   ;;  %v2709_v63 = vld [vmem:[#allocation7 + $0x468] ss:$20 sps:$4 sm:$0xff]  }
 0x128   :  { %1693 = vmatprep.subr.bf16.mxu1 %v2648_v0  ;;  %1822 = vmatprep.subr.bf16.mxu0 %v2651_v2  ;;  %v275_v12 = vpack.c.bf16 %v3037_v9, %v3033_v4  ;;  %v2476_v13 = vpop.f32.mrb[11].mxu0  ;;  %v2714_v2 = vld [vmem:[#allocation7 + $0x48c] ss:$20 sps:$4 sm:$0xff]   ;;  %v2717_v3 = vld [vmem:[#allocation7 + $0x494] ss:$20 sps:$4 sm:$0xff]  }
 0x129   :  { %1721 = vmatprep.mubr.bf16.mxu1 %v3035_v8  ;;  %1850 = vmatprep.mubr.bf16.mxu0 %v3035_v8  ;;  %v331_v0 = vpack.i.b16 %v314_v61, %v314_v61  ;;  %v2712_v5 = vld [vmem:[#allocation7 + $0x488] ss:$20 sps:$4 sm:$0xff]   ;;  %v2718_v29 = vld [vmem:[#allocation7 + $0x4b0] ss:$20 sps:$4 sm:$0xff]   ;;  %v2721_v13 = vld [vmem:[#allocation7 + $0x4b8] ss:$20 sps:$4 sm:$0xff]  }
 0x12a   :  { %v2775_v61 = vld [vmem:[#allocation7 + $0x61c] ss:$20 sps:$4 sm:$0xff]   ;;  %v2783_v9 = vld [vmem:[#allocation7 + $0x178] ss:$20 sps:$4 sm:$0xff]  }
 0x12b   :  { %1694 = vmatpush1.bf16.msra.mxu1 %v2646_v6  ;;  %1823 = vmatpush1.bf16.msra.mxu0 %v2649_v7  ;;  %v2715_v6 = vld [vmem:[#allocation7 + $0x490] ss:$20 sps:$4 sm:$0xff]   ;;  %v336_v7 = vrot.slane %v331_v0, %v3014_v32  ;;  %v2776_v0 = vld [vmem:[#allocation7 + $0x620] ss:$20 sps:$4 sm:$0xff]  }
 0x12c   :  { %1695 = vmatprep.subr.bf16.mxu1 %v2654_v10  ;;  %1824 = vmatprep.subr.bf16.mxu0 %v2657_v11  ;;  %v2720_v10 = vld [vmem:[#allocation7 + $0x4b4] ss:$20 sps:$4 sm:$0xff]   ;;  %v2723_v11 = vld [vmem:[#allocation7 + $0x4bc] ss:$20 sps:$4 sm:$0xff]  }
 0x12d   :  { %v2782_v4 = vld [vmem:[#allocation7 + $0x290] ss:$20 sps:$4 sm:$0xff]  }
 0x12f   :  { %1696 = vmatpush1.bf16.msra.mxu1 %v2652_v14  ;;  %1825 = vmatpush1.bf16.msra.mxu0 %v2655_v15  ;;  %v353_v14 = vadd.bf16 %v336_v7, %v273_v58  ;;  %v2726_v15 = vld [vmem:[#allocation7 + $0x4dc] ss:$20 sps:$4 sm:$0xff]  }
 0x130   :  { %1697 = vmatprep.subr.bf16.mxu1 %v2660_v16  ;;  %1826 = vmatprep.subr.bf16.mxu0 %v2663_v17  ;;  %v2729_v16 = vld [vmem:[#allocation7 + $0x4e4] ss:$20 sps:$4 sm:$0xff]   ;;  %v2736_v58 = vld [vmem:[#allocation7 + $0x528] ss:$20 sps:$4 sm:$0xff]  }
 0x131   :  { %v2724_v17 = vld [vmem:[#allocation7 + $0x4d8] ss:$20 sps:$4 sm:$0xff]  }
 0x133   :  { %1698 = vmatpush1.bf16.msra.mxu1 %v2658_v18  ;;  %1827 = vmatpush1.bf16.msra.mxu0 %v2661_v20  ;;  %v2727_v18 = vld [vmem:[#allocation7 + $0x4e0] ss:$20 sps:$4 sm:$0xff]   ;;  %v358_v20 = vmul.bf16 1009007652, %v353_v14 }
 0x134   :  { %1699 = vmatprep.subr.bf16.mxu1 %v2666_v21  ;;  %1828 = vmatprep.subr.bf16.mxu0 %v2669_v22  ;;  %v2732_v21 = vld [vmem:[#allocation7 + $0x504] ss:$20 sps:$4 sm:$0xff]   ;;  %v2735_v22 = vld [vmem:[#allocation7 + $0x50c] ss:$20 sps:$4 sm:$0xff]  }
 0x137   :  { %1700 = vmatpush1.bf16.msra.mxu1 %v2664_v23  ;;  %1829 = vmatpush1.bf16.msra.mxu0 %v2667_v27  ;;  %v2730_v23 = vld [vmem:[#allocation7 + $0x500] ss:$20 sps:$4 sm:$0xff]   ;;  %v2733_v27 = vld [vmem:[#allocation7 + $0x508] ss:$20 sps:$4 sm:$0xff]  }
 0x138   :  { %1701 = vmatprep.subr.bf16.mxu1 %v2672_v28  ;;  %1830 = vmatprep.subr.bf16.mxu0 %v2675_v30  ;;  %v3049_v28 = vmax.bf16 %v358_v20, %v353_v14  ;;  %v2739_v30 = vld [vmem:[#allocation7 + $0x530] ss:$20 sps:$4 sm:$0xff]   ;;  %v2789_v14 = vld [vmem:[#allocation7 + $0x60] ss:$20 sps:$4 sm:$0xff]  }
 0x139   :  { %v2795_v20 = vld [vmem:[#allocation7 + $0x1f0] ss:$20 sps:$4 sm:$0xff]  }
 0x13b   :  { %1702 = vmatpush1.bf16.msra.mxu1 %v2670_v31  ;;  %1831 = vmatpush1.bf16.msra.mxu0 %v2673_v33  ;;  %v2744_v31 = vld [vmem:[#allocation7 + $0x554] ss:$20 sps:$4 sm:$0xff]   ;;  %v2747_v33 = vld [vmem:[#allocation7 + $0x55c] ss:$20 sps:$4 sm:$0xff]  }
 0x13c   :  { %1703 = vmatprep.subr.bf16.mxu1 %v2678_v34  ;;  %1832 = vmatprep.subr.bf16.mxu0 %v2681_v35  ;;  %v277_v34 = vcombine.high %v3003_v26, %v3003_v26  ;;  %v2742_v35 = vld [vmem:[#allocation7 + $0x550] ss:$20 sps:$4 sm:$0xff]  }
 0x13d   :  { %v2756_v26 = vld [vmem:[#allocation7 + $0x5a4] ss:$20 sps:$4 sm:$0xff]  }
 0x13f   :  { %1704 = vmatpush1.bf16.msra.mxu1 %v2676_v36  ;;  %1833 = vmatpush1.bf16.msra.mxu0 %v2679_v37  ;;  %v2745_v36 = vld [vmem:[#allocation7 + $0x558] ss:$20 sps:$4 sm:$0xff]   ;;  %v2750_v37 = vld [vmem:[#allocation7 + $0x57c] ss:$20 sps:$4 sm:$0xff]  }
 0x140   :  { %1705 = vmatprep.subr.bf16.mxu1 %v2684_v38  ;;  %1834 = vmatprep.subr.bf16.mxu0 %v2687_v39  ;;  %v2753_v38 = vld [vmem:[#allocation7 + $0x584] ss:$20 sps:$4 sm:$0xff]   ;;  %v291_v39 = vrot.slane %v277_v34, %v2998_v25  ;;  %v2807_v34 = vld [vmem:[#allocation7 + $0x268] ss:$20 sps:$4 sm:$0xff]  }
 0x143   :  { %1706 = vmatpush1.bf16.msra.mxu1 %v2682_v40  ;;  %1835 = vmatpush1.bf16.msra.mxu0 %v2685_v41  ;;  %v2748_v40 = vld [vmem:[#allocation7 + $0x578] ss:$20 sps:$4 sm:$0xff]   ;;  %v2751_v41 = vld [vmem:[#allocation7 + $0x580] ss:$20 sps:$4 sm:$0xff]  }
 0x144   :  { %1707 = vmatprep.subr.bf16.mxu1 %v2690_v42  ;;  %1836 = vmatprep.subr.bf16.mxu0 %v2693_v43  ;;  %v2759_v42 = vld [vmem:[#allocation7 + $0x5ac] ss:$20 sps:$4 sm:$0xff]  }
 0x145   :  { %v2754_v43 = vld [vmem:[#allocation7 + $0x5a0] ss:$20 sps:$4 sm:$0xff]  }
 0x147   :  { %1708 = vmatpush1.bf16.msra.mxu1 %v2688_v44  ;;  %1837 = vmatpush1.bf16.msra.mxu0 %v2691_v45  ;;  %v2757_v44 = vld [vmem:[#allocation7 + $0x5a8] ss:$20 sps:$4 sm:$0xff]  }
 0x148   :  { %1709 = vmatprep.subr.bf16.mxu1 %v2696_v46  ;;  %1838 = vmatprep.subr.bf16.mxu0 %v2699_v47  ;;  %v2763_v46 = vld [vmem:[#allocation7 + $0x5cc] ss:$20 sps:$4 sm:$0xff]   ;;  %v2766_v47 = vld [vmem:[#allocation7 + $0x5d4] ss:$20 sps:$4 sm:$0xff]  }
 0x14b   :  { %1710 = vmatpush1.bf16.msra.mxu1 %v2694_v49  ;;  %1839 = vmatpush1.bf16.msra.mxu0 %v2697_v51  ;;  %v2761_v49 = vld [vmem:[#allocation7 + $0x5c8] ss:$20 sps:$4 sm:$0xff]   ;;  %v2764_v51 = vld [vmem:[#allocation7 + $0x5d0] ss:$20 sps:$4 sm:$0xff]  }
 0x14c   :  { %1711 = vmatprep.subr.bf16.mxu1 %v2702_v52  ;;  %1840 = vmatprep.subr.bf16.mxu0 %v2705_v54  ;;  %v2769_v54 = vld [vmem:[#allocation7 + $0x5f4] ss:$20 sps:$4 sm:$0xff]  }
 0x14f   :  { %1712 = vmatpush1.bf16.msra.mxu1 %v2700_v56  ;;  %1841 = vmatpush1.bf16.msra.mxu0 %v2703_v57  ;;  %v2772_v56 = vld [vmem:[#allocation7 + $0x5fc] ss:$20 sps:$4 sm:$0xff]  }
 0x150   :  { %1713 = vmatprep.subr.bf16.mxu1 %v2708_v59  ;;  %1842 = vmatprep.subr.bf16.mxu0 %v2711_v60  ;;  %v2767_v57 = vld [vmem:[#allocation7 + $0x5f0] ss:$20 sps:$4 sm:$0xff]   ;;  %v2770_v59 = vld [vmem:[#allocation7 + $0x5f8] ss:$20 sps:$4 sm:$0xff]  }
 0x153   :  { %1714 = vmatpush1.bf16.msra.mxu1 %v2706_v62  ;;  %1843 = vmatpush1.bf16.msra.mxu0 %v2709_v63  ;;  %v2778_v62 = vld [vmem:[#allocation7 + $0x624] ss:$20 sps:$4 sm:$0xff]  }
 0x154   :  { %1715 = vmatprep.subr.bf16.mxu1 %v2714_v2  ;;  %1844 = vmatprep.subr.bf16.mxu0 %v2717_v3  ;;  %v2773_v63 = vld [vmem:[#allocation7 + $0x618] ss:$20 sps:$4 sm:$0xff]   ;;  %v2779_v3 = vld [vmem:[#allocation7 + $0x150] ss:$20 sps:$4 sm:$0xff]  }
 0x157   :  { %1716 = vmatpush1.bf16.msra.mxu1 %v2712_v5  ;;  %1845 = vmatpush1.bf16.msra.mxu0 %v2715_v6  ;;  %v2780_v5 = vld [vmem:[#allocation7 + $0x3d0] ss:$20 sps:$4 sm:$0xff]  }
 0x158   :  { %1717 = vmatprep.subr.bf16.mxu1 %v2720_v10  ;;  %1846 = vmatprep.subr.bf16.mxu0 %v2723_v11  ;;  %v2781_v6 = vld [vmem:[#allocation7 + $0x10] ss:$20 sps:$4 sm:$0xff]   ;;  %v2785_v10 = vld [vmem:[#allocation7 + $0x38] ss:$20 sps:$4 sm:$0xff]  }
 0x159   :  { %v2786_v11 = vld [vmem:[#allocation7 + $0x2b8] ss:$20 sps:$4 sm:$0xff]  }
 0x15b   :  { %1718 = vmatpush1.bf16.msra.mxu1 %v2718_v29  ;;  %1847 = vmatpush1.bf16.msra.mxu0 %v2721_v13  ;;  %v2787_v29 = vld [vmem:[#allocation7 + $0x1a0] ss:$20 sps:$4 sm:$0xff]  }
 0x15c   :  { %1719 = vmatprep.subr.bf16.mxu1 %v2726_v15  ;;  %1848 = vmatprep.subr.bf16.mxu0 %v2729_v16  ;;  %v2788_v13 = vld [vmem:[#allocation7 + $0x420] ss:$20 sps:$4 sm:$0xff]   ;;  %v2791_v16 = vld [vmem:[#allocation7 + $0x1c8] ss:$20 sps:$4 sm:$0xff]  }
 0x15d   :  { %v2790_v15 = vld [vmem:[#allocation7 + $0x2e0] ss:$20 sps:$4 sm:$0xff]  }
 0x15f   :  { %1720 = vmatpush1.bf16.msra.mxu1 %v2724_v17  ;;  %1849 = vmatpush1.bf16.msra.mxu0 %v2727_v18  ;;  %v2792_v17 = vld [vmem:[#allocation7 + $0x448] ss:$20 sps:$4 sm:$0xff]  }
 0x160   :  { %1732 = vmatprep.subr.bf16.mxu1 %v2732_v21  ;;  %1861 = vmatprep.subr.bf16.mxu0 %v2735_v22  ;;  %v2793_v18 = vld [vmem:[#allocation7 + $0x88] ss:$20 sps:$4 sm:$0xff]   ;;  %v2797_v21 = vld [vmem:[#allocation7 + $0xb0] ss:$20 sps:$4 sm:$0xff]  }
 0x161   :  { %v2798_v22 = vld [vmem:[#allocation7 + $0x330] ss:$20 sps:$4 sm:$0xff]  }
 0x162   :  { %1722 = vmatmul.mubr.bf16.vlgmr.msra.gmra.mrb[0].mxu1 %v3049_v28  ;;  %1851 = vmatmul.mubr.bf16.vlgmr.msra.gmra.mrb[12].mxu0 %v3049_v28 }
 0x163   :  { %1733 = vmatpush1.bf16.msra.mxu1 %v2730_v23  ;;  %1862 = vmatpush1.bf16.msra.mxu0 %v2733_v27  ;;  %v2799_v23 = vld [vmem:[#allocation7 + $0x218] ss:$20 sps:$4 sm:$0xff]  }
 0x164   :  { %1734 = vmatprep.subr.bf16.mxu1 %v2738_v48  ;;  %1863 = vmatprep.subr.bf16.mxu0 %v2741_v53  ;;  %v2800_v27 = vld [vmem:[#allocation7 + $0x498] ss:$20 sps:$4 sm:$0xff]  }
 0x165   :  { %1764 = vmatprep.mubr.bf16.mxu1 %v2897_v1  ;;  %1893 = vmatprep.mubr.bf16.mxu0 %v2897_v1  ;;  %v306_v1 = vrot.slane %v291_v39, %v2998_v25  ;;  %v2801_v48 = vld [vmem:[#allocation7 + $0xd8] ss:$20 sps:$4 sm:$0xff]  }
 0x166   :  { %v2802_v53 = vld [vmem:[#allocation7 + $0x358] ss:$20 sps:$4 sm:$0xff]  }
 0x167   :  { %1735 = vmatpush1.bf16.msra.mxu1 %v2736_v58  ;;  %1864 = vmatpush1.bf16.msra.mxu0 %v2739_v30  ;;  %v345_v45 = vpack.i.b16 %v306_v1, %v306_v1  ;;  %v2803_v58 = vld [vmem:[#allocation7 + $0x240] ss:$20 sps:$4 sm:$0xff]   ;;  %v2812_v39 = vld [vmem:[#allocation7 + $0x538] ss:$20 sps:$4 sm:$0xff]  }
 0x168   :  { %1736 = vmatprep.subr.bf16.mxu1 %v2744_v31  ;;  %1865 = vmatprep.subr.bf16.mxu0 %v2747_v33  ;;  %v2804_v30 = vld [vmem:[#allocation7 + $0x4c0] ss:$20 sps:$4 sm:$0xff]  }
 0x169   :  { %v350_v52 = vrot.slane %v345_v45, %v3014_v32  ;;  %v2805_v31 = vld [vmem:[#allocation7 + $0x100] ss:$20 sps:$4 sm:$0xff]  }
 0x16a   :  { %v2806_v33 = vld [vmem:[#allocation7 + $0x380] ss:$20 sps:$4 sm:$0xff]  }
 0x16b   :  { %1737 = vmatpush1.bf16.msra.mxu1 %v2742_v35  ;;  %1866 = vmatpush1.bf16.msra.mxu0 %v2745_v36  ;;  %v355_v60 = vadd.bf16 %v350_v52, %v275_v12  ;;  %v2784_v12 = vld [vmem:[#allocation7 + $0x3f8] ss:$20 sps:$4 sm:$0xff]   ;;  %v2808_v35 = vld [vmem:[#allocation7 + $0x4e8] ss:$20 sps:$4 sm:$0xff]  }
 0x16c   :  { %1738 = vmatprep.subr.bf16.mxu1 %v2750_v37  ;;  %1867 = vmatprep.subr.bf16.mxu0 %v2753_v38  ;;  %v2809_v36 = vld [vmem:[#allocation7 + $0x128] ss:$20 sps:$4 sm:$0xff]   ;;  %v2811_v38 = vld [vmem:[#allocation7 + $0x510] ss:$20 sps:$4 sm:$0xff]  }
 0x16d   :  { %v360_v2 = vmul.bf16 1009007652, %v355_v60  ;;  %v2810_v37 = vld [vmem:[#allocation7 + $0x3a8] ss:$20 sps:$4 sm:$0xff]  }
 0x16e   :  { %v3085_v1 = vld [vmem:[%s3125_s4] sm:$0x1f] }
 0x16f   :  { %1739 = vmatpush1.bf16.msra.mxu1 %v2748_v40  ;;  %1868 = vmatpush1.bf16.msra.mxu0 %v2751_v41  ;;  %v3063_v7 = vmax.bf16 %v360_v2, %v355_v60  ;;  %v2813_v40 = vld [vmem:[#allocation7 + $0x560] ss:$20 sps:$4 sm:$0xff]   ;;  %v2814_v41 = vld [vmem:[#allocation7 + $0x588] ss:$20 sps:$4 sm:$0xff]  }
 0x170   :  { %1740 = vmatprep.subr.bf16.mxu1 %v2756_v26  ;;  %1869 = vmatprep.subr.bf16.mxu0 %v2759_v42  ;;  %v2815_v26 = vld [vmem:[#allocation7 + $0x5b0] ss:$20 sps:$4 sm:$0xff]   ;;  %v2818_v42 = vld [vmem:[#allocation7 + $0x628] ss:$20 sps:$4 sm:$0xff]  }
 0x173   :  { %1741 = vmatpush1.bf16.msra.mxu1 %v2754_v43  ;;  %1870 = vmatpush1.bf16.msra.mxu0 %v2757_v44  ;;  %v2040_v43 = vrot.slane %v3085_v1, %v2998_v25 }
 0x174   :  { %1742 = vmatprep.subr.bf16.mxu1 %v2763_v46  ;;  %1871 = vmatprep.subr.bf16.mxu0 %v2766_v47 }
 0x175   :  { %v2048_v44 = vcombine.high %v2040_v43, %v2040_v43  ;;  %v2055_v45 = vrot.slane %v2040_v43, %v2998_v25 }
 0x177   :  { %1743 = vmatpush1.bf16.msra.mxu1 %v2761_v49  ;;  %1872 = vmatpush1.bf16.msra.mxu0 %v2764_v51  ;;  %v2069_v46 = vrot.slane %v2048_v44, %v2998_v25  ;;  %v2070_v47 = vcombine.high %v2055_v45, %v2055_v45  ;;  %v2073_v51 = vpack.i.b16 %v2055_v45, %v2055_v45 }
 0x178   :  { %1744 = vmatprep.subr.bf16.mxu1 %v2769_v54  ;;  %1873 = vmatprep.subr.bf16.mxu0 %v2772_v56 }
 0x179   :  { %v2071_v49 = vcombine.high %v2069_v46, %v2069_v46  ;;  %v2080_v52 = vpack.i.b16 %v2069_v46, %v2069_v46 }
 0x17b   :  { %1745 = vmatpush1.bf16.msra.mxu1 %v2767_v57  ;;  %1874 = vmatpush1.bf16.msra.mxu0 %v2770_v59  ;;  %v2094_v54 = vpack.i.b16 %v2071_v49, %v2071_v49  ;;  %v2085_v2 = vrot.slane %v2080_v52, %v3014_v32 }
 0x17c   :  { %1746 = vmatprep.subr.bf16.mxu1 %v2775_v61  ;;  %1875 = vmatprep.subr.bf16.mxu0 %v2778_v62  ;;  %v2078_v61 = vrot.slane %v2073_v51, %v3014_v32 }
 0x17f   :  { %1747 = vmatpush1.bf16.msra.mxu1 %v2773_v63  ;;  %1876 = vmatpush1.bf16.msra.mxu0 %v2776_v0 }
 0x180   :  { %2416 = vmatprep.subr.bf16.mxu1 %v2779_v3  ;;  %2438 = vmatprep.subr.bf16.mxu0 %v2780_v5  ;;  %v2099_v3 = vrot.slane %v2094_v54, %v3014_v32 }
 0x182   :  { %1765 = vmatmul.mubr.bf16.vlgmr.msra.gmra.mrb[0].mxu1 %v3063_v7  ;;  %1894 = vmatmul.mubr.bf16.vlgmr.msra.gmra.mrb[12].mxu0 %v3063_v7 }
 0x183   :  { %2417 = vmatpush3.bf16.msra.mxu1 %v2781_v6  ;;  %1936 = vmatprep.mubr.bf16.mxu1 %v3020_v50  ;;  %v2794_v50 = vld [vmem:[#allocation7 + $0x308] ss:$20 sps:$4 sm:$0xff]  }
 0x184   :  { %2439 = vmatpush3.bf16.msra.mxu0 %v2782_v4  ;;  %1977 = vmatprep.mubr.bf16.mxu0 %v3035_v8  ;;  %v2796_v8 = vld [vmem:[#allocation7 + $0x470] ss:$20 sps:$4 sm:$0xff]  }
 0x185   :  { %2418 = vmatprep.subr.bf16.mxu1 %v2783_v9  ;;  %2440 = vmatprep.subr.bf16.mxu0 %v2784_v12 }
 0x187   :  { %2419 = vmatpush3.bf16.msra.mxu1 %v2785_v10 }
 0x188   :  { %2441 = vmatpush3.bf16.msra.mxu0 %v2786_v11  ;;  %2420 = vmatprep.subr.bf16.mxu1 %v2787_v29  ;;  %v3098_v29 = vld [vmem:[%s3126_s5] sm:$0x1f] }
 0x189   :  { %2442 = vmatprep.subr.bf16.mxu0 %v2788_v13 }
 0x18b   :  { %2421 = vmatpush3.bf16.msra.mxu1 %v2789_v14  ;;  %v2140_v14 = vsub.s32 1, %v2995_v24 }
 0x18c   :  { %2443 = vmatpush3.bf16.msra.mxu0 %v2790_v15  ;;  %2422 = vmatprep.subr.bf16.mxu1 %v2791_v16 }
 0x18d   :  { %2444 = vmatprep.subr.bf16.mxu0 %v2792_v17 }
 0x18f   :  { %2423 = vmatpush3.bf16.msra.mxu1 %v2793_v18  ;;  %v2144_v18 = vsub.s32 2, %v2995_v24 }
 0x190   :  { %2445 = vmatpush3.bf16.msra.mxu0 %v2794_v50  ;;  %2424 = vmatprep.subr.bf16.mxu1 %v2795_v20 }
 0x191   :  { %2446 = vmatprep.subr.bf16.mxu0 %v2796_v8 }
 0x193   :  { %2425 = vmatpush3.bf16.msra.mxu1 %v2797_v21  ;;  %v2137_v21 = vrot.slane %v3098_v29, %v3014_v32 }
 0x194   :  { %2447 = vmatpush3.bf16.msra.mxu0 %v2798_v22  ;;  %2426 = vmatprep.subr.bf16.mxu1 %v2799_v23  ;;  %v2148_v23 = vsub.s32 3, %v2995_v24 }
 0x195   :  { %2448 = vmatprep.subr.bf16.mxu0 %v2800_v27 }
 0x197   :  { %2427 = vmatpush3.bf16.msra.mxu1 %v2801_v48  ;;  %v2141_v48 = vrot.slane %v3098_v29, %v2140_v14 }
 0x198   :  { %2449 = vmatpush3.bf16.msra.mxu0 %v2802_v53  ;;  %2428 = vmatprep.subr.bf16.mxu1 %v2803_v58 }
 0x199   :  { %2450 = vmatprep.subr.bf16.mxu0 %v2804_v30 }
 0x19b   :  { %2429 = vmatpush3.bf16.msra.mxu1 %v2805_v31  ;;  %v2145_v31 = vrot.slane %v3098_v29, %v2144_v18 }
 0x19c   :  { %2451 = vmatpush3.bf16.msra.mxu0 %v2806_v33  ;;  %2430 = vmatprep.subr.bf16.mxu1 %v2807_v34 }
 0x19d   :  { %2452 = vmatprep.subr.bf16.mxu0 %v2808_v35 }
 0x19f   :  { %2431 = vmatpush3.bf16.msra.mxu1 %v2809_v36 }
 0x1a0   :  { %2453 = vmatpush3.bf16.msra.mxu0 %v2810_v37  ;;  %2477 = vmatprep.subr.bf16.mxu1 %v2898_v19 }
 0x1a2   :  { %1937 = vmatmul.mubr.bf16.vlgmr.msra.gmra.mrb[4].mxu1 %v3025_v55  ;;  %v2816_v55 = vld [vmem:[#allocation7 + $0x5d8] ss:$20 sps:$4 sm:$0xff]  }
 0x1a3   :  { %1978 = vmatmul.mubr.bf16.vlgmr.msra.gmra.mrb[16].mxu0 %v3049_v28  ;;  %2478 = vmatpush3.bf16.msra.mxu1 %v2811_v38  ;;  %v2817_v28 = vld [vmem:[#allocation7 + $0x600] ss:$20 sps:$4 sm:$0xff]   ;;  %v2149_v38 = vrot.slane %v3098_v29, %v2148_v23 }
 0x1a4   :  { %2479 = vmatprep.subr.bf16.mxu1 %v2898_v19  ;;  %2493 = vmatprep.mubr.msk.bf16.mxu1 %vm2899_vm1, %v2898_v19 }
 0x1a7   :  { %2480 = vmatpush3.bf16.msra.mxu1 %v2812_v39 }
 0x1a8   :  { %2481 = vmatprep.subr.bf16.mxu1 %v2898_v19 }
 0x1ab   :  { %2482 = vmatpush3.bf16.msra.mxu1 %v2813_v40 }
 0x1ac   :  { %2483 = vmatprep.subr.bf16.mxu1 %v2898_v19 }
 0x1af   :  { %2484 = vmatpush3.bf16.msra.mxu1 %v2814_v41 }
 0x1b0   :  { %2485 = vmatprep.subr.bf16.mxu1 %v2898_v19 }
 0x1b3   :  { %2486 = vmatpush3.bf16.msra.mxu1 %v2815_v26 }
 0x1b4   :  { %2487 = vmatprep.subr.bf16.mxu1 %v2898_v19 }
 0x1b7   :  { %2488 = vmatpush3.bf16.msra.mxu1 %v2816_v55 }
 0x1b8   :  { %2489 = vmatprep.subr.bf16.mxu1 %v2898_v19 }
 0x1bb   :  { %2490 = vmatpush3.bf16.msra.mxu1 %v2817_v28 }
 0x1bc   :  { %2491 = vmatprep.subr.bf16.mxu1 %v2898_v19  ;;  %v2087_v19 = vpack.i.b16 %v2070_v47, %v2070_v47 }
 0x1be   :  { %v2092_v62 = vrot.slane %v2087_v19, %v3014_v32 }
 0x1bf   :  { %2492 = vmatpush3.bf16.msra.mxu1 %v2818_v42 }
 0x1c2   :  { %2494 = vmatmul.mubr.bf16.vlgmr.msra.gmra.mrb[8].mxu1 %v3063_v7 }
 0x255   :  { %v1766_v56 = vpop.f32.mrb[0].mxu1  ;;  %v1895_v57 = vpop.f32.mrb[12].mxu0 }
 0x256   :  { %v1768_v59 = vpop.f32.mrb[1].mxu1  ;;  %v1897_v60 = vpop.f32.mrb[13].mxu0 }
 0x257   :  { %v1770_v63 = vpop.f32.mrb[2].mxu1  ;;  %v1899_v0 = vpop.f32.mrb[14].mxu0 }
 0x258   :  { %v2027_v5 = vpack.c.bf16 %v1770_v63, %v1766_v56  ;;  %v2029_v6 = vpack.c.bf16 %v1899_v0, %v1895_v57  ;;  %v1772_v7 = vpop.f32.mrb[3].mxu1  ;;  %v1901_v4 = vpop.f32.mrb[15].mxu0 }
 0x259   :  { %v2028_v9 = vpack.c.bf16 %v1772_v7, %v1768_v59  ;;  %v2030_v12 = vpack.c.bf16 %v1901_v4, %v1897_v60  ;;  %v2033_v7 = vcombine.high %v3085_v1, %v3085_v1 }
 0x25a   :  { %v2107_v10 = vadd.bf16 %v2078_v61, %v2027_v5  ;;  %v2109_v11 = vadd.bf16 %v2092_v62, %v2029_v6 }
 0x25b   :  { %v2108_v13 = vadd.bf16 %v2085_v2, %v2028_v9  ;;  %v2110_v15 = vadd.bf16 %v2099_v3, %v2030_v12  ;;  %v2047_v4 = vrot.slane %v2033_v7, %v2998_v25 }
 0x25c   :  { %v2112_v16 = vmul.bf16 1009007652, %v2107_v10  ;;  %v2114_v17 = vmul.bf16 1009007652, %v2109_v11 }
 0x25d   :  { %v2113_v50 = vmul.bf16 1009007652, %v2108_v13  ;;  %v2115_v20 = vmul.bf16 1009007652, %v2110_v15  ;;  %v2062_v9 = vrot.slane %v2047_v4, %v2998_v25 }
 0x25e   :  { %v2117_v8 = vmax.bf16 %v2112_v16, %v2107_v10  ;;  %v2119_v22 = vmax.bf16 %v2114_v17, %v2109_v11 }
 0x25f   :  { %v2118_v27 = vmax.bf16 %v2113_v50, %v2108_v13  ;;  %v2120_v53 = vmax.bf16 %v2115_v20, %v2110_v15  ;;  %v2101_v12 = vpack.i.b16 %v2062_v9, %v2062_v9  ;;  %v2152_v20 = vsub.s32 4, %v2995_v24 }
 0x260   :  { %v2123_v58 = vunpack.c.l.bf16 %v2117_v8  ;;  %v2128_v30 = vunpack.c.h.bf16 %v2117_v8  ;;  %v2125_v33 = vunpack.c.l.bf16 %v2119_v22  ;;  %v2130_v34 = vunpack.c.h.bf16 %v2119_v22 }
 0x261   :  { %v2124_v35 = vunpack.c.l.bf16 %v2118_v27  ;;  %v2129_v36 = vunpack.c.h.bf16 %v2118_v27  ;;  %v2131_v41 = vunpack.c.h.bf16 %v2120_v53  ;;  %v2126_v26 = vunpack.c.l.bf16 %v2120_v53 }
 0x262   :  { %v2164_v37 = vmul.f32 %v2137_v21, %v2128_v30  ;;  %v2159_v39 = vmul.f32 %v2137_v21, %v2123_v58  ;;  %v2161_v28 = vmul.f32 %v2145_v31, %v2125_v33  ;;  %v2166_v43 = vmul.f32 %v2145_v31, %v2130_v34  ;;  %v2412_v58 = vld [vmem:[#allocation2] ss:$0 sm:$0xff] }
 0x263   :  { %v2165_v40 = vmul.f32 %v2141_v48, %v2129_v36  ;;  %v2160_v55 = vmul.f32 %v2141_v48, %v2124_v35  ;;  %v2162_v45 = vmul.f32 %v2149_v38, %v2126_v26  ;;  %v2167_v47 = vmul.f32 %v2149_v38, %v2131_v41 }
 0x264   :  { %v2106_v16 = vrot.slane %v2101_v12, %v3014_v32  ;;  %v2153_v1 = vrot.slane %v3098_v29, %v2152_v20 }
 0x265   :  { %v2169_v42 = vadd.f32 %v2160_v55, %v2159_v39  ;;  %v2175_v44 = vadd.f32 %v2165_v40, %v2164_v37 }
 0x267   :  { %v2170_v46 = vadd.f32 %v2169_v42, %v2161_v28  ;;  %v2176_v49 = vadd.f32 %v2175_v44, %v2166_v43 }
 0x269   :  { %v2171_v51 = vadd.f32 %v2170_v46, %v2162_v45  ;;  %v2177_v19 = vadd.f32 %v2176_v49, %v2167_v47 }
 0x275   :  { %v2432_v52 = vpop.f32.mrb[4].mxu1 }
 0x276   :  { %v2454_v54 = vpop.f32.mrb[16].mxu0  ;;  %v2433_v56 = vpop.f32.mrb[5].mxu1 }
 0x277   :  { %v2434_v57 = vadd.f32 %v2433_v56, %v2432_v52  ;;  %v2455_v59 = vpop.f32.mrb[17].mxu0  ;;  %v2435_v60 = vpop.f32.mrb[6].mxu1 }
 0x278   :  { %v2456_v61 = vadd.f32 %v2455_v59, %v2454_v54  ;;  %v2457_v62 = vpop.f32.mrb[18].mxu0  ;;  %v2436_v63 = vpop.f32.mrb[7].mxu1 }
 0x279   :  { %v2437_v0 = vadd.f32 %v2436_v63, %v2435_v60  ;;  %v2458_v2 = vpop.f32.mrb[19].mxu0 }
 0x27a   :  { %v2459_v3 = vadd.f32 %v2458_v2, %v2457_v62  ;;  %v1980_v5 = vadd.f32 %v2456_v61, %v2434_v57 }
 0x27c   :  { %v1983_v6 = vadd.f32 %v2459_v3, %v2437_v0 }
 0x295   :  { %v2020_v10 = vpop.f32.mrb[8].mxu1 }
 0x296   :  { %v2021_v11 = vadd.f32 %v2020_v10, %v1980_v5  ;;  %v2495_v13 = vpop.f32.mrb[9].mxu1 }
 0x297   :  { %v2023_v14 = vpop.f32.mrb[10].mxu1 }
 0x298   :  { %v2024_v15 = vadd.f32 %v2023_v14, %v1983_v6  ;;  %v2496_v17 = vpop.f32.mrb[11].mxu1 }
 0x29a   :  { %v2031_v18 = vpack.c.bf16 %v2024_v15, %v2021_v11 }
 0x29c   :  { %v2111_v50 = vadd.bf16 %v2106_v16, %v2031_v18 }
 0x29e   :  { %v2116_v8 = vmul.bf16 1009007652, %v2111_v50 }
 0x2a0   :  { %v2121_v21 = vmax.bf16 %v2116_v8, %v2111_v50 }
 0x2a2   :  { %v2127_v22 = vunpack.c.l.bf16 %v2121_v21  ;;  %v2132_v23 = vunpack.c.h.bf16 %v2121_v21 }
 0x2a4   :  { %v2163_v25 = vmul.f32 %v2153_v1, %v2127_v22  ;;  %v2168_v27 = vmul.f32 %v2153_v1, %v2132_v23 }
 0x2a6   :  { %v2172_v48 = vadd.f32 %v2171_v51, %v2163_v25  ;;  %v2178_v53 = vadd.f32 %v2177_v19, %v2168_v27 }
 0x2a8   :  { %2173 = vadd.xlane.f32.xlu0 %v2172_v48 }
 0x2ac   :  { %2179 = vadd.xlane.f32.xlu0 %v2178_v53 }
 0x335   :  { %v2174_v32 = vpop.xlane.xlu0 %2173 }
 0x336   :  { %v2188_v30 = vadd.f32 %v2412_v58, %v2174_v32 }
 0x338   :  { %2191 = vst.msk [vmem:[%s3128_s7] sm:$0xff] %vm2190_vm2, %v2188_v30 }
 0x339   :  { %v2180_v24 = vpop.xlane.xlu0 %2179 }
 0x33a   :  { %v2189_v31 = vadd.f32 %v2412_v58, %v2180_v24 }
 0x33c   :  { %2192 = vst.msk [vmem:[%s3128_s7 + $0x8] sm:$0xff] %vm2190_vm2, %v2189_v31 }
 0x33d   :  { %2197 = vsyncpa [#allocation4], 1 }
 0x33e   :  { %2198 = vsyncpa [#allocation6], 1 }

</bundles_post_ra>
